<compile_context>
chip_gen: v5e
topology: v5e:2x2
jax: 0.10.0
libtpu: 0.0.40
codegen_flags: <defaults>
</compile_context>

<pallas_src>
import functools
import math

import jax
import jax.numpy as jnp
from jax.experimental import pallas as pl
from jax.experimental.pallas import tpu as pltpu


_LANE_CANDIDATES = (1024, 512, 256, 128)
_TARGET_BLOCK_ELEMS = 512 * 512  # ~1 MiB per f32 buffer per block


def _gaussian_noise_kernel(x_ref, bits_ref, o_ref, *, stddev):
    """o = x + stddev * N(0,1), normals via Box-Muller on uniform bits.

    Pair trick: uniforms are taken from the two lane-halves of the bits tile
    and both the cos and sin branches are emitted, so each (log, sqrt) pair
    produces two standard normals covering the full tile.
    """
    bits = bits_ref[...]                      # uint32, shape (R, L)
    half = bits.shape[-1] // 2                # L is always a multiple of 128
    b1 = bits[:, :half]
    b2 = bits[:, half:]

    inv24 = jnp.float32(1.0 / (1 << 24))
    u1 = ((b1 >> 8).astype(jnp.float32) + 1.0) * inv24   # (0, 1] -> log safe
    u2 = (b2 >> 8).astype(jnp.float32) * inv24            # [0, 1)

    r = jnp.sqrt(-2.0 * jnp.log(u1))
    theta = jnp.float32(2.0 * math.pi) * u2
    z = jnp.concatenate([r * jnp.cos(theta), r * jnp.sin(theta)], axis=-1)

    x = x_ref[...].astype(jnp.float32)
    o_ref[...] = (x + z * jnp.float32(stddev)).astype(o_ref.dtype)


def _pick_lanes(n):
    """Widest lane count (multiple of 128) that divides n; else pad to 128."""
    for lanes in _LANE_CANDIDATES:
        if n % lanes == 0:
            return lanes, n
    lanes = 128
    n_pad = ((n + lanes - 1) // lanes) * lanes
    return lanes, n_pad


def gaussian_noise(x, stddev, key, training=True):
    """x: any-shape float array (e.g. NCHW). Returns x + N(0, stddev^2)."""
    if not training:
        return x

    orig_shape = x.shape
    orig_dtype = x.dtype
    n = x.size
    if n == 0:
        return x

    lanes, n_pad = _pick_lanes(n)
    flat = x.reshape(-1)
    if n_pad != n:
        # Rare ragged case: tail pad of < 128 elements.
        flat = jnp.pad(flat, (0, n_pad - n))
    rows = n_pad // lanes
    x2d = flat.reshape(rows, lanes)

    # One 32-bit uniform word per output element; the kernel converts each
    # pair of words into two normals (Box-Muller with both branches).
    bits = jax.random.bits(key, (rows, lanes), dtype=jnp.uint32)

    # Block sizing: ~1 MiB f32 per buffer; x + bits + out double-buffered is
    # ~6 MiB, comfortably under the scoped-VMEM default on v5e/v6e/v7x.
    block_rows = max(8, _TARGET_BLOCK_ELEMS // lanes)
    block_rows -= block_rows % 8
    if block_rows >= rows:
        block_rows = rows                    # single full-array block
    grid = (pl.cdiv(rows, block_rows),)      # ragged tail handled by Pallas

    kernel = functools.partial(_gaussian_noise_kernel, stddev=float(stddev))

    out2d = pl.pallas_call(
        kernel,
        out_shape=jax.ShapeDtypeStruct((rows, lanes), x2d.dtype),
        grid=grid,
        in_specs=[
            pl.BlockSpec((block_rows, lanes), lambda i: (i, 0)),
            pl.BlockSpec((block_rows, lanes), lambda i: (i, 0)),
        ],
        out_specs=pl.BlockSpec((block_rows, lanes), lambda i: (i, 0)),
        compiler_params=pltpu.CompilerParams(
            dimension_semantics=("parallel",),
        ),
    )(x2d, bits)

    out = out2d.reshape(-1)
    if n_pad != n:
        out = out[:n]
    return out.reshape(orig_shape).astype(orig_dtype)


if __name__ == "__main__":
    root = jax.random.PRNGKey(0)
    x_key, noise_key = jax.random.split(root)

    # NCHW input consistent with a conv-style module: batch=2, channels=4, 16x16
    x = jax.random.normal(x_key, (2, 4, 16, 16), dtype=jnp.float32)
    stddev = 0.1

    # training mode: noise added inside the Pallas kernel
    y_train = gaussian_noise(x, stddev=stddev, key=noise_key, training=True)
    y_train = jax.block_until_ready(y_train)

    # eval mode: identity
    y_eval = gaussian_noise(x, stddev=stddev, key=noise_key, training=False)
    y_eval = jax.block_until_ready(y_eval)

    # sanity checks
    assert y_train.shape == x.shape and y_train.dtype == x.dtype
    assert jnp.allclose(y_eval, x)
    resid = y_train - x
    assert abs(float(resid.mean())) < 0.05          # ~zero-mean noise
    assert 0.05 < float(resid.std()) < 0.2          # std ~ stddev = 0.1

    print("KERNEL_OK")
</pallas_src>

<mosaic_0001>
module attributes {stable_mosaic.version = 11 : i64} {
  func.func @_gaussian_noise_kernel(%arg0: i32, %arg1: memref<2x1024xf32, #tpu.memory_space<vmem>>, %arg2: memref<2x1024xi32, #tpu.memory_space<vmem>>, %arg3: memref<2x1024xf32, #tpu.memory_space<vmem>>) attributes {dimension_semantics = [#tpu.dimension_semantics<parallel>], iteration_bounds = array<i64: 1>, scalar_prefetch = 0 : i64, scratch_operands = 0 : i64, tpu.core_type = #tpu.core_type<tc>, window_params = [{transform_indices = @transform_0, window_bounds = array<i64: 2, 1024>}, {transform_indices = @transform_1, window_bounds = array<i64: 2, 1024>}, {transform_indices = @transform_2, window_bounds = array<i64: 2, 1024>}]} {
    %c0 = arith.constant 0 : index
    %c0_0 = arith.constant 0 : index
    %0 = vector.load %arg2[%c0, %c0_0] : memref<2x1024xi32, #tpu.memory_space<vmem>>, vector<2x1024xi32>
    %1 = vector.extract_strided_slice %0 {offsets = [0, 0], sizes = [2, 512], strides = [1, 1]} : vector<2x1024xi32> to vector<2x512xi32>
    %2 = vector.extract_strided_slice %0 {offsets = [0, 512], sizes = [2, 512], strides = [1, 1]} : vector<2x1024xi32> to vector<2x512xi32>
    %c8_i32 = arith.constant 8 : i32
    %3 = vector.broadcast %c8_i32 : i32 to vector<2x512xi32>
    %4 = arith.shrui %1, %3 : vector<2x512xi32>
    %5 = arith.uitofp %4 : vector<2x512xi32> to vector<2x512xf32>
    %cst = arith.constant 1.000000e+00 : f32
    %6 = vector.broadcast %cst : f32 to vector<2x512xf32>
    %7 = arith.addf %5, %6 : vector<2x512xf32>
    %cst_1 = arith.constant 5.96046448E-8 : f32
    %8 = vector.broadcast %cst_1 : f32 to vector<2x512xf32>
    %9 = arith.mulf %7, %8 : vector<2x512xf32>
    %c8_i32_2 = arith.constant 8 : i32
    %10 = vector.broadcast %c8_i32_2 : i32 to vector<2x512xi32>
    %11 = arith.shrui %2, %10 : vector<2x512xi32>
    %12 = arith.uitofp %11 : vector<2x512xi32> to vector<2x512xf32>
    %cst_3 = arith.constant 5.96046448E-8 : f32
    %13 = vector.broadcast %cst_3 : f32 to vector<2x512xf32>
    %14 = arith.mulf %12, %13 : vector<2x512xf32>
    %15 = math.log %9 : vector<2x512xf32>
    %cst_4 = arith.constant -2.000000e+00 : f32
    %16 = vector.broadcast %cst_4 : f32 to vector<2x512xf32>
    %17 = arith.mulf %16, %15 : vector<2x512xf32>
    %18 = math.sqrt %17 : vector<2x512xf32>
    %cst_5 = arith.constant 6.28318548 : f32
    %19 = vector.broadcast %cst_5 : f32 to vector<2x512xf32>
    %20 = arith.mulf %19, %14 : vector<2x512xf32>
    %21 = math.cos %20 : vector<2x512xf32>
    %22 = arith.mulf %18, %21 : vector<2x512xf32>
    %23 = math.sin %20 : vector<2x512xf32>
    %24 = arith.mulf %18, %23 : vector<2x512xf32>
    %25 = tpu.concatenate %22, %24 in 1 : vector<2x512xf32>, vector<2x512xf32> -> vector<2x1024xf32>
    %c0_6 = arith.constant 0 : index
    %c0_7 = arith.constant 0 : index
    %26 = vector.load %arg1[%c0_6, %c0_7] : memref<2x1024xf32, #tpu.memory_space<vmem>>, vector<2x1024xf32>
    %cst_8 = arith.constant 1.000000e-01 : f32
    %27 = vector.broadcast %cst_8 : f32 to vector<2x1024xf32>
    %28 = arith.mulf %25, %27 : vector<2x1024xf32>
    %29 = arith.addf %26, %28 : vector<2x1024xf32>
    %c0_9 = arith.constant 0 : index
    %c0_10 = arith.constant 0 : index
    %30 = vector.load %arg3[%c0_9, %c0_10] : memref<2x1024xf32, #tpu.memory_space<vmem>>, vector<2x1024xf32>
    tpu.vector_store %arg3[%c0_9, %c0_10], %29 {strides = array<i32>} : memref<2x1024xf32, #tpu.memory_space<vmem>>, vector<2x1024xf32>,
    return
  }
  func.func @transform_0(%arg0: i32) -> (i32, i32) {
    %c0_i32 = arith.constant 0 : i32
    %c0_i32_0 = arith.constant 0 : i32
    return %arg0, %c0_i32 : i32, i32
  }
  func.func @transform_1(%arg0: i32) -> (i32, i32) {
    %c0_i32 = arith.constant 0 : i32
    %c0_i32_0 = arith.constant 0 : i32
    return %arg0, %c0_i32 : i32, i32
  }
  func.func @transform_2(%arg0: i32) -> (i32, i32) {
    %c0_i32 = arith.constant 0 : i32
    %c0_i32_0 = arith.constant 0 : i32
    return %arg0, %c0_i32 : i32, i32
  }
}

</mosaic_0001>

<bundles_post_ra>
// kernel: tpu_custom_call.1
= control target key start
LH: loop header
LB: loop body
LE: loop exit
PB: predicated region body
PF: predicated region fallthrough
CT: control target
= control target key end

     0   :  { %7 = vsyncpa [#allocation3], 0  ;;  %s656_s0 = inlined_call_operand.hbm [shape: f32[2,1024], index: 0, kind: input, shape index: {}]   ;;  %s657_s1 = inlined_call_operand.hbm [shape: u32[2,1024], index: 1, kind: input, shape index: {}]   ;;  %s658_s2 = inlined_call_operand.hbm [shape: f32[2,1024], index: 2, kind: output, shape index: {}]  }
   0x1   :  { %8 = vsyncpa [#allocation6], 0 }
   0x2   :  { %9 = vsyncpa [#allocation4], 0  ;;  %s15_s11 = sshll.u32 %s656_s0, 4  ;;  %s561_s12 = smov [#allocation2]   ;;  %s16_s11 = int_to_ptr.hbm [resolvable:$true] %s15_s11 }
   0x3   :  { %s17_s13 = sshll.u32 %s561_s12, 4  ;;  %s26_s16 = sshll.u32 %s657_s1, 4  ;;  %s18_s13 = int_to_ptr.vmem [resolvable:$true] %s17_s13  ;;  %s27_s16 = int_to_ptr.hbm [resolvable:$true] %s26_s16 }
   0x4   :  { %20 = dma.hbm_to_vmem [thread:$0]  %s16_s11, 256, %s18_s13, [#allocation3]  }
   0x5   :  { %s562_s17 = smov [#allocation5]  }
   0x6   :  { %s28_s18 = sshll.u32 %s562_s17, 4  ;;  %s29_s18 = int_to_ptr.vmem [resolvable:$true] %s28_s18 }
   0x7   :  { %31 = dma.hbm_to_vmem [thread:$0]  %s27_s16, 256, %s29_s18, [#allocation6]  }
   0x8   :  { %555 = dma.done.wait [#allocation3], 256  }
   0x9   :  { %556 = vsyncadd [#allocation3], 4294967040 }
   0xa   :  { %557 = dma.done.wait [#allocation6], 256  }
   0xb   :  { %558 = vsyncadd [#allocation6], 4294967040  ;;  %v41_v0 = vld [vmem:[#allocation5 + $0x8] sm:$0xff]  ;;  %v40_v15 = vld [vmem:[#allocation5] sm:$0xff]  ;;  %v563_v23 = vmov 683565275  }
   0xc   :  { %v51_v1 = vshrl.u32 %v41_v0, 8  ;;  %v42_v18 = vshrl.u32 %v40_v15, 8  ;;  %v564_v25 = vmov 2475754826   ;;  %v565_v27 = vmov 2131351028  }
   0xd   :  { %v566_v29 = vmov 2102212464   ;;  %v567_v31 = vmov 920167782   ;;  %v568_v38 = vmov 1326507024  }
   0xe   :  { %v52_v2 = vshrl.u32 %v51_v1, 16  ;;  %v53_v3 = vand.u32 65535, %v51_v1  ;;  %v43_v33 = vshrl.u32 %v42_v18, 16  ;;  %v44_v46 = vand.u32 65535, %v42_v18  ;;  %s570_s0 = smov [#allocation7]   ;;  %s452_s21 = sshll.u32 %s658_s2, 4  ;;  %s453_s21 = int_to_ptr.hbm [resolvable:$true] %s452_s21 }
   0xf   :  { %s450_s1 = sshll.u32 %s570_s0, 4  ;;  %s451_s1 = int_to_ptr.vmem [resolvable:$true] %s450_s1 }
  0x10   :  { %v54_v4 = vcvt.s32.f32 %v52_v2  ;;  %v56_v5 = vcvt.s32.f32 %v53_v3  ;;  %v45_v48 = vcvt.s32.f32 %v43_v33  ;;  %v47_v62 = vcvt.s32.f32 %v44_v46 }
  0x12   :  { %v55_v6 = vmul.f32 65536.0, %v54_v4  ;;  %v46_v61 = vmul.f32 65536.0, %v45_v48 }
  0x14   :  { %v57_v7 = vadd.f32 %v56_v5, %v55_v6 }
  0x16   :  { %v58_v8 = vmul.f32 5.9604645e-08, %v57_v7 }
  0x18   :  { %v592_v9 = vmul.f32 6.2831855, %v58_v8 }
  0x1a   :  { %v78_v10 = vand.u32 2139095040, %v592_v9  ;;  %v75_v12 = vand.u32 2147483647, %v592_v9  ;;  %vm77_vm12 = vcmp.lt.s32.totalorder %v592_v9, 0 }
  0x1c   :  { %v79_v11 = vshrl.u32 %v78_v10, 23  ;;  %v82_v16 = vand.u32 8388607, %v75_v12  ;;  %vm76_vm13 = vcmp.le.f32.partialorder %v75_v12, 0.7853982 }
  0x1e   :  { %v463_v13 = vadd.s32 4294967169, %v79_v11  ;;  %v83_v20 = vor.u32 8388608, %v82_v16  ;;  %v48_v11 = vadd.f32 %v47_v62, %v46_v61 }
  0x20   :  { %v85_v14 = vadd.s32 1, %v463_v13  ;;  %v601_v40 = vshll.u32 %v83_v20, 8 }
  0x22   :  { %vm86_vm0 = vcmp.gt.s32.totalorder %v85_v14, 0  ;;  %v124_v54 = vand.u32 65535, %v601_v40  ;;  %v125_v55 = vshrl.u32 %v601_v40, 16 }
  0x23   :  { %v87_v17 = vsel %vm86_vm0, %v85_v14, 0 }
  0x24   :  { %v89_v19 = vand.u32 31, %v87_v17  ;;  %v598_v21 = vshrl.u32 %v87_v17, 5 }
  0x26   :  { %v90_v22 = vsub.s32 32, %v89_v19  ;;  %v92_v24 = vshll.u32 %v563_v23, %v89_v19  ;;  %v95_v26 = vshll.u32 %v564_v25, %v89_v19  ;;  %v98_v28 = vshll.u32 %v565_v27, %v89_v19 }
  0x27   :  { %v101_v30 = vshll.u32 %v566_v29, %v89_v19  ;;  %v104_v32 = vshll.u32 %v567_v31, %v89_v19  ;;  %vm107_vm1 = vcmp.lt.s32.totalorder %v598_v21, 1  ;;  %vm110_vm2 = vcmp.lt.s32.totalorder %v598_v21, 4 }
  0x28   :  { %v93_v34 = vshrl.u32 %v564_v25, %v90_v22  ;;  %v96_v35 = vshrl.u32 %v565_v27, %v90_v22  ;;  %v99_v36 = vshrl.u32 %v566_v29, %v90_v22  ;;  %v102_v37 = vshrl.u32 %v567_v31, %v90_v22 }
  0x29   :  { %v105_v39 = vshrl.u32 %v568_v38, %v90_v22  ;;  %vm109_vm3 = vcmp.lt.s32.totalorder %v598_v21, 3  ;;  %vm108_vm4 = vcmp.lt.s32.totalorder %v598_v21, 2  ;;  %v91_v0 = vshrl.u32 %v563_v23, %v90_v22 }
  0x2a   :  { %v94_v41 = vor.u32 %v93_v34, %v92_v24  ;;  %v97_v42 = vor.u32 %v96_v35, %v95_v26  ;;  %v100_v43 = vor.u32 %v99_v36, %v98_v28  ;;  %v103_v44 = vor.u32 %v102_v37, %v101_v30 }
  0x2b   :  { %v106_v45 = vor.u32 %v105_v39, %v104_v32  ;;  %v569_v19 = vmov 0   ;;  %v49_v35 = vadd.f32 1.0, %v48_v11 }
  0x2c   :  { %v115_v47 = vsel %vm107_vm1, %v94_v41, %v97_v42  ;;  %v116_v49 = vsel %vm110_vm2, %v103_v44, 920167782  ;;  %v119_v50 = vsel %vm107_vm1, %v97_v42, %v100_v43  ;;  %v111_v15 = vsel %vm107_vm1, %v91_v0, %v94_v41 }
  0x2d   :  { %v120_v51 = vsel %vm110_vm2, %v106_v45, 1326507024  ;;  %v117_v52 = vsel %vm109_vm3, %v100_v43, %v116_v49  ;;  %v112_v18 = vsel %vm110_vm2, %v100_v43, 2102212464 }
  0x2e   :  { %v121_v53 = vsel %vm109_vm3, %v103_v44, %v120_v51  ;;  %v118_v56 = vsel %vm108_vm4, %v115_v47, %v117_v52  ;;  %v113_v29 = vsel %vm109_vm3, %v97_v42, %v112_v18  ;;  %v50_v44 = vmul.f32 5.9604645e-08, %v49_v35 }
  0x2f   :  { %v122_v57 = vsel %vm108_vm4, %v119_v50, %v121_v53  ;;  %v148_v60 = vand.u32 65535, %v118_v56  ;;  %v149_v63 = vshrl.u32 %v118_v56, 16  ;;  %v114_v38 = vsel %vm108_vm4, %v111_v15, %v113_v29 }
  0x30   :  { %v126_v58 = vand.u32 65535, %v122_v57  ;;  %v127_v59 = vshrl.u32 %v122_v57, 16  ;;  %v168_v45 = vmul.u32 %v601_v40, %v114_v38  ;;  %479 = vlog2.f32 %v50_v44 }
  0x31   :  { %v150_v4 = vmul.u32 %v148_v60, %v124_v54  ;;  %v151_v5 = vmul.u32 %v149_v63, %v124_v54  ;;  %v152_v6 = vmul.u32 %v148_v60, %v125_v55  ;;  %v153_v13 = vmul.u32 %v149_v63, %v125_v55 }
  0x32   :  { %v128_v1 = vmul.u32 %v126_v58, %v124_v54  ;;  %v129_v2 = vmul.u32 %v127_v59, %v124_v54  ;;  %v130_v3 = vmul.u32 %v126_v58, %v125_v55  ;;  %v131_v7 = vmul.u32 %v127_v59, %v125_v55 }
  0x33   :  { %v154_v14 = vshll.u32 %v151_v5, 16  ;;  %v156_v17 = vshll.u32 %v152_v6, 16  ;;  %v155_v27 = vshrl.u32 %v151_v5, 16  ;;  %v157_v33 = vshrl.u32 %v152_v6, 16 }
  0x34   :  { %v132_v8 = vshll.u32 %v129_v2, 16  ;;  %v134_v10 = vshll.u32 %v130_v3, 16  ;;  %v133_v23 = vshrl.u32 %v129_v2, 16  ;;  %v135_v30 = vshrl.u32 %v130_v3, 16 }
  0x35   :  { %vm158_vm6 = vc.u32 %v150_v4, %v154_v14  ;;  %v160_v22 = vadd.s32 %v154_v14, %v150_v4 }
  0x36   :  { %vm136_vm5 = vc.u32 %v128_v1, %v132_v8  ;;  %v138_v16 = vadd.s32 %v132_v8, %v128_v1  ;;  %v159_v25 = vsel %vm158_vm6, 1, %v569_v19  ;;  %v480_v50 = vpop.eup %479 }
  0x37   :  { %v137_v20 = vsel %vm136_vm5, 1, %v569_v19  ;;  %v161_v28 = vadd.s32 %v159_v25, %v153_v13  ;;  %vm162_vm8 = vc.u32 %v160_v22, %v156_v17  ;;  %v164_v37 = vadd.s32 %v160_v22, %v156_v17 }
  0x38   :  { %v139_v24 = vadd.s32 %v137_v20, %v131_v7  ;;  %vm140_vm7 = vc.u32 %v138_v16, %v134_v10  ;;  %v163_v32 = vsel %vm162_vm8, 1, %v569_v19  ;;  %v60_v53 = vmul.f32 0.6931472, %v480_v50 }
  0x39   :  { %v141_v26 = vsel %vm140_vm7, 1, %v569_v19  ;;  %v165_v34 = vadd.s32 %v163_v32, %v161_v28  ;;  %vm218_vm5 = vweird.f32 %v592_v9  ;;  %vm430_vm7 = vcmask 1041408  }
  0x3a   :  { %v143_v31 = vadd.s32 %v141_v26, %v139_v24  ;;  %v633_v55 = vmul.f32 -2.0, %v60_v53  ;;  %vm432_vm8 = vcmask 1045508  }
  0x3b   :  { %v166_v39 = vadd.s32 %v165_v34, %v155_v27 }
  0x3c   :  { %v144_v36 = vadd.s32 %v143_v31, %v133_v23  ;;  %481 = vrsqrt.f32 %v633_v55  ;;  %vm69_vm14 = vcmp.eq.f32.partialorder %v633_v55, inf  ;;  %vm71_vm0 = vcmp.eq.f32.partialorder %v633_v55, 0.0 }
  0x3d   :  { %v167_v43 = vadd.s32 %v166_v39, %v157_v33 }
  0x3e   :  { %v145_v41 = vadd.s32 %v144_v36, %v135_v30 }
  0x3f   :  { %v171_v46 = vadd.s32 1, %v167_v43 }
  0x40   :  { %vm170_vm9 = vc.u32 %v145_v41, %v164_v37  ;;  %v169_v40 = vadd.s32 %v164_v37, %v145_v41  ;;  %v72_v37 = vand.u32 2147483648, %v633_v55 }
  0x41   :  { %v172_v42 = vsel %vm170_vm9, %v171_v46, %v167_v43  ;;  %vm434_vm9 = vcmask 1043456  }
  0x42   :  { %v173_v47 = vadd.s32 %v172_v42, %v168_v45  ;;  %v482_v0 = vpop.eup %481 }
  0x43   :  { %v63_v5 = vmul.f32 %v482_v0, %v633_v55 }
  0x44   :  { %v174_v48 = vadd.s32 536870912, %v173_v47 }
  0x45   :  { %v64_v8 = vmul.f32 %v482_v0, %v63_v5 }
  0x46   :  { %v175_v49 = vshrl.u32 %v174_v48, 30 }
  0x47   :  { %v65_v13 = vmul.f32 0.5, %v64_v8 }
  0x48   :  { %v176_v51 = vshll.u32 %v175_v49, 30  ;;  %v199_v14 = vsub.s32 4, %v175_v49 }
  0x49   :  { %v66_v19 = vsub.f32 1.5, %v65_v13 }
  0x4a   :  { %v177_v52 = vsub.s32 %v173_v47, %v176_v51  ;;  %v200_v20 = vsel %vm77_vm12, %v199_v14, %v175_v49 }
  0x4b   :  { %v202_v24 = vsel %vm76_vm13, 0, %v200_v20  ;;  %v67_v27 = vmul.f32 %v482_v0, %v66_v19 }
  0x4c   :  { %vm178_vm10 = vcmp.lt.s32.totalorder %v177_v52, 0  ;;  %v179_v21 = vsub.s32 0, %v177_v52  ;;  %v374_v12 = vadd.s32 3, %v202_v24  ;;  %v219_v30 = vand.u32 3, %v202_v24 }
  0x4d   :  { %v68_v33 = vmul.f32 %v67_v27, %v633_v55 }
  0x4e   :  { %v180_v54 = vsel %vm178_vm10, %v179_v21, %v177_v52  ;;  %v375_v36 = vand.u32 3, %v374_v12  ;;  %vm224_vm15 = vcmp.eq.s32.totalorder %v219_v30, 2  ;;  %vm220_vm1 = vcmp.lt.s32.totalorder %v219_v30, 2 }
  0x4f   :  { %v181_v56 = vclz %v180_v54  ;;  %v70_v41 = vsel %vm69_vm14, %v633_v55, %v68_v33  ;;  %vm221_vm2 = vcmp.eq.s32.totalorder %v219_v30, 0 }
  0x50   :  { %vm377_vm3 = vcmp.eq.s32.totalorder %v375_v36, 0  ;;  %vm380_vm4 = vcmp.eq.s32.totalorder %v375_v36, 2  ;;  %v73_v45 = vsel %vm71_vm0, %v72_v37, %v70_v41  ;;  %vm376_vm6 = vcmp.lt.s32.totalorder %v375_v36, 2 }
  0x51   :  { %v464_v57 = vadd.s32 4294967294, %v181_v56 }
  0x53   :  { %vm465_vm11 = vcmp.lt.s32.totalorder %v464_v57, 0 }
  0x54   :  { %v184_v58 = vsel %vm465_vm11, 0, %v464_v57 }
  0x55   :  { %v185_v59 = vsub.s32 32, %v184_v58  ;;  %v186_v60 = vshll.u32 %v177_v52, %v184_v58  ;;  %v189_v61 = vsub.s32 4294967266, %v184_v58 }
  0x57   :  { %v187_v62 = vshrl.u32 %v169_v40, %v185_v59  ;;  %v190_v63 = vadd.s32 127, %v189_v61 }
  0x59   :  { %v188_v1 = vor.u32 %v187_v62, %v186_v60  ;;  %v191_v2 = vshll.u32 %v190_v63, 23  ;;  %v406_v62 = vld [vmem:[#allocation2] sm:$0xff] }
  0x5b   :  { %v192_v3 = vor.u32 4788187, %v191_v2  ;;  %v195_v4 = vcvt.s32.f32 %v188_v1 }
  0x5d   :  { %v193_v6 = vand.u32 2147483647, %v192_v3 }
  0x5f   :  { %v196_v7 = vmul.f32 %v195_v4, %v193_v6 }
  0x61   :  { %v197_v10 = vxor.u32 2147483648, %v196_v7 }
  0x63   :  { %v198_v11 = vsel %vm77_vm12, %v197_v10, %v196_v7 }
  0x64   :  { %v201_v15 = vsel %vm76_vm13, %v592_v9, %v198_v11 }
  0x65   :  { %v203_v16 = vmul.f32 %v201_v15, %v201_v15 }
  0x67   :  { %v204_v17 = vmul.f32 -0.001358992, %v203_v16  ;;  %v211_v18 = vmul.f32 -0.00019511016, %v203_v16 }
  0x69   :  { %v205_v22 = vadd.f32 0.041655596, %v204_v17  ;;  %v212_v23 = vadd.f32 0.008332121, %v211_v18 }
  0x6b   :  { %v206_v25 = vmul.f32 %v205_v22, %v203_v16  ;;  %v213_v26 = vmul.f32 %v212_v23, %v203_v16 }
  0x6d   :  { %v207_v28 = vadd.f32 -0.4999988, %v206_v25  ;;  %v214_v29 = vadd.f32 -0.16666654, %v213_v26 }
  0x6f   :  { %v208_v31 = vmul.f32 %v207_v28, %v203_v16  ;;  %v215_v32 = vmul.f32 %v214_v29, %v203_v16  ;;  %v407_v16 = vld [vmem:[#allocation2 + $0x8] sm:$0xff] }
  0x71   :  { %v209_v34 = vadd.f32 1.0, %v208_v31  ;;  %v216_v35 = vadd.f32 1.0, %v215_v32 }
  0x73   :  { %v217_v38 = vmul.f32 %v216_v35, %v201_v15  ;;  %v225_v39 = vxor.u32 2147483648, %v209_v34 }
  0x75   :  { %v222_v43 = vxor.u32 2147483648, %v217_v38  ;;  %v226_v44 = vsel %vm224_vm15, %v225_v39, %v217_v38  ;;  %v382_v48 = vsel %vm380_vm4, %v225_v39, %v217_v38 }
  0x77   :  { %v223_v46 = vsel %vm221_vm2, %v209_v34, %v222_v43  ;;  %v379_v47 = vsel %vm377_vm3, %v209_v34, %v222_v43 }
  0x78   :  { %v227_v42 = vsel %vm220_vm1, %v223_v46, %v226_v44  ;;  %v383_v51 = vsel %vm376_vm6, %v379_v47, %v382_v48 }
  0x79   :  { %v228_v49 = vsel %vm218_vm5, nan, %v227_v42  ;;  %v384_v52 = vsel %vm218_vm5, nan, %v383_v51 }
  0x7a   :  { %v229_v50 = vmul.f32 %v228_v49, %v73_v45  ;;  %v385_v53 = vmul.f32 %v384_v52, %v73_v45 }
  0x7c   :  { %387 = vst [vmem:[#allocation1] ss:$4 sm:$0xff] %v229_v50 }
  0x83   :  { %v388_v21 = vld.sshfl [vmem:[#allocation1] sm:$0xff pattern:$0x73625140]  ;;  %v389_v54 = vld.sshfl [vmem:[#allocation1 + $0x8] sm:$0xff pattern:$0x73625140] }
  0x84   :  { %v390_v55 = vld.sshfl [vmem:[#allocation1 + $0x10] sm:$0xff pattern:$0x73625140]  ;;  %v391_v56 = vld.sshfl [vmem:[#allocation1 + $0x18] sm:$0xff pattern:$0x73625140] }
  0x85   :  { %397 = vst [vmem:[#allocation1] ss:$4 sm:$0xff] %v385_v53  ;;  %v409_v57 = vmul.f32 0.1, %v389_v54  ;;  %v410_v40 = vmul.f32 0.1, %v390_v55 }
  0x86   :  { %v411_v9 = vmul.f32 0.1, %v391_v56  ;;  %v408_v58 = vmul.f32 0.1, %v388_v21 }
  0x87   :  { %v424_v59 = vrot.slane %v409_v57, 6  ;;  %v425_v60 = vrot.slane %v410_v40, 4 }
  0x88   :  { %v426_v61 = vrot.slane %v411_v9, 2 }
  0x89   :  { %v431_v63 = vsel %vm430_vm7, %v408_v58, %v424_v59 }
  0x8a   :  { %v433_v0 = vsel %vm432_vm8, %v425_v60, %v426_v61 }
  0x8b   :  { %v435_v1 = vsel %vm434_vm9, %v431_v63, %v433_v0 }
  0x8c   :  { %v441_v2 = vadd.f32 %v435_v1, %v406_v62  ;;  %v398_v3 = vld.sshfl [vmem:[#allocation1] sm:$0xff pattern:$0x73625140]  ;;  %v399_v4 = vld.sshfl [vmem:[#allocation1 + $0x8] sm:$0xff pattern:$0x73625140] }
  0x8d   :  { %v400_v5 = vld.sshfl [vmem:[#allocation1 + $0x10] sm:$0xff pattern:$0x73625140]  ;;  %v401_v6 = vld.sshfl [vmem:[#allocation1 + $0x18] sm:$0xff pattern:$0x73625140] }
  0x8e   :  { %443 = vst [vmem:[#allocation7] sm:$0xff] %v441_v2  ;;  %v413_v7 = vmul.f32 0.1, %v399_v4  ;;  %v414_v8 = vmul.f32 0.1, %v400_v5 }
  0x8f   :  { %v415_v10 = vmul.f32 0.1, %v401_v6  ;;  %v412_v11 = vmul.f32 0.1, %v398_v3 }
  0x90   :  { %v427_v13 = vrot.slane %v413_v7, 6  ;;  %v428_v14 = vrot.slane %v414_v8, 4 }
  0x91   :  { %v429_v15 = vrot.slane %v415_v10, 2 }
  0x92   :  { %v436_v17 = vsel %vm430_vm7, %v412_v11, %v427_v13 }
  0x93   :  { %v437_v18 = vsel %vm432_vm8, %v428_v14, %v429_v15 }
  0x94   :  { %v438_v19 = vsel %vm434_vm9, %v436_v17, %v437_v18 }
  0x95   :  { %v442_v20 = vadd.f32 %v438_v19, %v407_v16 }
  0x97   :  { %444 = vst [vmem:[#allocation7 + $0x8] sm:$0xff] %v442_v20 }
  0x98   :  { %455 = dma.vmem_to_hbm [thread:$0]  %s451_s1, 256, %s453_s21, [#allocation4]  }
  0x99   :  { %559 = dma.done.wait [#allocation4], 256  }
  0x9a   :  { %560 = vsyncadd [#allocation4], 4294967040 }
  0x9b   :  { %460 = vsyncpa [#allocation3], 1 }
  0x9c   :  { %461 = vsyncpa [#allocation6], 1 }
  0x9d   :  { %462 = vsyncpa [#allocation4], 1 }

</bundles_post_ra>
